<compile_context>
chip_gen: v5e
topology: v5e:2x2
jax: 0.10.0
libtpu: 0.0.40
codegen_flags: <defaults>
</compile_context>

<pallas_src>
import functools
import math

import jax
import jax.numpy as jnp
from jax.experimental import pallas as pl
from jax.experimental.pallas import tpu as pltpu


def _gate_kernel(x_ref, w1_ref, b1_ref, w2_ref, b2_ref, out_ref, acc_ref, *,
                 inv_seq_len):
    # x_ref  : (b_tile, s_tile, E)  streamed input tile (native dtype)
    # w1_ref : (E, G), b1_ref: (1, G)
    # w2_ref : (G, 2), b2_ref: (1, 2)
    # out_ref: (b_tile, 2)
    # acc_ref: (b_tile, E) f32 scratch accumulator (persists across S steps)
    s = pl.program_id(1)

    @pl.when(s == 0)
    def _():
        acc_ref[...] = jnp.zeros_like(acc_ref)

    # Partial sum over this S tile; widen to f32 only during the reduction.
    acc_ref[...] += jnp.sum(x_ref[...], axis=1, dtype=jnp.float32)

    @pl.when(s == pl.num_programs(1) - 1)
    def _():
        # Finalize: mean = accumulated sum * (1/S), done once per B tile.
        avg = acc_ref[...] * inv_seq_len                          # (b_tile, E)

        # first linear + exact (erf) GELU — matches torch.nn.GELU() default.
        # Feed the MXU the weights' native dtype (no f32 upcast of (E,G)).
        w1 = w1_ref[...]
        h = jnp.dot(avg.astype(w1.dtype), w1,
                    preferred_element_type=jnp.float32)
        h = h + b1_ref[...].astype(jnp.float32)                   # (b_tile, G)
        h = 0.5 * h * (1.0 + jax.lax.erf(h * (1.0 / math.sqrt(2.0))))

        # second linear + sigmoid
        w2 = w2_ref[...]
        g = jnp.dot(h.astype(w2.dtype), w2,
                    preferred_element_type=jnp.float32)
        g = g + b2_ref[...].astype(jnp.float32)                   # (b_tile, 2)
        out_ref[...] = jax.nn.sigmoid(g).astype(out_ref.dtype)


def _default_vmem_target_bytes():
    """~Half of physical VMEM (capped at 48 MiB): big streaming blocks on
    v5e/v6e (128 MiB physical) while leaving headroom inside v7x's 64 MiB."""
    try:
        cap = pltpu.get_tpu_info().vmem_capacity_bytes
    except Exception:           # unknown chip / query unavailable
        cap = 64 << 20          # assume the smallest (v7x per-core) VMEM
    return int(min(cap // 2, 48 << 20))


def _sublane_multiple(dtype):
    # Sub-32-bit dtypes pack along sublanes: 8 rows for f32, 16 for bf16,
    # 32 for int8/fp8.
    return max(8, 32 // jnp.dtype(dtype).itemsize)


def _choose_b_tile(B):
    """Multiple-of-8 (or full-B) batch tile; prefer >= 2 blocks on the
    parallel grid axis so v7x's second TensorCore receives work."""
    if B % 8 == 0:
        divisors = [t for t in range(8, B + 1, 8) if B % t == 0]
        split = [t for t in divisors if B // t >= 2]
        return max(split) if split else min(divisors)
    # TODO(synk): for small / non-multiple-of-8 B, a 2-wide parallel core axis
    # over split-S partial sums (combined in a second pass) would engage the
    # second v7x core; here the parallel axis just has a single block.
    return B


def _choose_s_tile(S, sublane, row_bytes, per_buffer_budget_bytes):
    """Largest multiple-of-`sublane` divisor of S whose x block fits the
    per-buffer budget; fallback is the *smallest* legal tile (never full S)."""
    candidates = [t for t in range(sublane, S + 1, sublane) if S % t == 0]
    if not candidates:
        return S                      # full extent is the only legal tile
    fitting = [t for t in candidates if t * row_bytes <= per_buffer_budget_bytes]
    return max(fitting) if fitting else min(candidates)


def _vmem_usage_bytes(b_tile, s_tile, E, G, x_itemsize, w_itemsize,
                      x_buffers=2):
    """Explicit VMEM model for this kernel's pipeline buffers + scratch."""
    x_blocks = x_buffers * b_tile * s_tile * E * x_itemsize
    # Weight/bias blocks have constant index maps (fetched once, never
    # re-DMA'd) but are still allocated double-buffered by the default
    # pipeline, so count 2x.
    weights = 2 * (E * G + G + G * 2 + 2) * w_itemsize
    acc = max(b_tile, 8) * E * 4
    out = 2 * max(b_tile, 8) * 128 * 4        # (b_tile, 2) pads to 128 lanes
    return x_blocks + weights + acc + out


def adaptive_reasoning_gate(x, w1, b1, w2, b2, *, s_tile=None, b_tile=None,
                            vmem_target_bytes=None):
    """Returns (attn_weight, ffn_weight), each of shape (B, 1, 1)."""
    B, S, E = x.shape
    G = w1.shape[1]
    x_itemsize = jnp.dtype(x.dtype).itemsize
    w_itemsize = jnp.dtype(w1.dtype).itemsize
    sublane = _sublane_multiple(x.dtype)

    if vmem_target_bytes is None:
        vmem_target_bytes = _default_vmem_target_bytes()

    # Batch tile: full B (legal full-extent block) or a multiple of 8,
    # preferring >= 2 blocks on the parallel axis.
    if b_tile is None:
        b_tile = _choose_b_tile(B)
    assert B % b_tile == 0 and (b_tile == B or b_tile % 8 == 0)

    # Sequence tile: dtype-aware granularity, sized from the VMEM model.
    if s_tile is None:
        fixed = _vmem_usage_bytes(b_tile, 0, E, G, x_itemsize, w_itemsize)
        per_buffer = max((vmem_target_bytes - fixed) // 2, 0)
        s_tile = _choose_s_tile(S, sublane, b_tile * E * x_itemsize, per_buffer)
    assert S % s_tile == 0 and (s_tile == S or s_tile % 8 == 0)

    # Explicit VMEM limit derived from the chosen blocks (+25% headroom for
    # layout padding / compiler scratch), floored at the usual 16 MiB default.
    total_vmem = _vmem_usage_bytes(b_tile, s_tile, E, G, x_itemsize, w_itemsize)
    vmem_limit_bytes = int(max(total_vmem + max(total_vmem // 4, 2 << 20),
                               16 << 20))

    kernel = functools.partial(_gate_kernel, inv_seq_len=1.0 / float(S))

    gate_weights = pl.pallas_call(
        kernel,
        out_shape=jax.ShapeDtypeStruct((B, 2), jnp.float32),
        grid_spec=pltpu.PrefetchScalarGridSpec(
            num_scalar_prefetch=0,
            grid=(B // b_tile, S // s_tile),
            in_specs=[
                # Streamed input: pipelined over the S (reduction) axis.
                pl.BlockSpec((b_tile, s_tile, E), lambda b, s: (b, s, 0)),
                # Weights/biases: constant block index -> DMA'd once, not
                # re-fetched per reduction step.
                pl.BlockSpec((E, G), lambda b, s: (0, 0)),
                pl.BlockSpec((1, G), lambda b, s: (0, 0)),
                pl.BlockSpec((G, 2), lambda b, s: (0, 0)),
                pl.BlockSpec((1, 2), lambda b, s: (0, 0)),
            ],
            out_specs=pl.BlockSpec((b_tile, 2), lambda b, s: (b, 0)),
            scratch_shapes=[pltpu.VMEM((b_tile, E), jnp.float32)],
        ),
        compiler_params=pltpu.CompilerParams(
            # B axis parallel (v7x megacore), S axis is the streamed reduction.
            dimension_semantics=("parallel", "arbitrary"),
            vmem_limit_bytes=vmem_limit_bytes,
        ),
    )(x, w1, b1.reshape(1, G), w2, b2.reshape(1, 2))

    attn_weight = gate_weights[:, 0][:, None, None]   # (B, 1, 1)
    ffn_weight = gate_weights[:, 1][:, None, None]    # (B, 1, 1)
    return attn_weight, ffn_weight


def _init_linear(key, fan_in, fan_out):
    """Deterministic init mimicking torch.nn.Linear (uniform +/- 1/sqrt(fan_in))."""
    kw, kb = jax.random.split(key)
    bound = 1.0 / math.sqrt(fan_in)
    w = jax.random.uniform(kw, (fan_in, fan_out), jnp.float32, -bound, bound)
    b = jax.random.uniform(kb, (fan_out,), jnp.float32, -bound, bound)
    return w, b


if __name__ == "__main__":
    # Small but tiling-exercising shapes.
    B, S, E, G = 2, 64, 128, 128   # batch, seq, embed_dim, gate_dim

    key = jax.random.PRNGKey(0)
    kx, k1, k2 = jax.random.split(key, 3)

    x = jax.random.normal(kx, (B, S, E), jnp.float32)
    w1, b1 = _init_linear(k1, E, G)
    w2, b2 = _init_linear(k2, G, 2)

    # reference in plain JAX
    avg = x.mean(axis=1)
    h = avg @ w1 + b1
    h = 0.5 * h * (1.0 + jax.lax.erf(h / math.sqrt(2.0)))
    ref = jax.nn.sigmoid(h @ w2 + b2)

    # 1) multi-step streaming reduction path (4 S-blocks of 16 rows each)
    attn_w, ffn_w = adaptive_reasoning_gate(x, w1, b1, w2, b2, s_tile=16)
    attn_w = jax.block_until_ready(attn_w)
    ffn_w = jax.block_until_ready(ffn_w)
    assert attn_w.shape == (B, 1, 1) and ffn_w.shape == (B, 1, 1)
    assert jnp.allclose(attn_w[:, 0, 0], ref[:, 0], atol=1e-5)
    assert jnp.allclose(ffn_w[:, 0, 0], ref[:, 1], atol=1e-5)

    # 2) auto-tiled path (VMEM-model-driven block sizing + vmem_limit_bytes)
    attn_w2, ffn_w2 = adaptive_reasoning_gate(x, w1, b1, w2, b2)
    attn_w2 = jax.block_until_ready(attn_w2)
    ffn_w2 = jax.block_until_ready(ffn_w2)
    assert jnp.allclose(attn_w2[:, 0, 0], ref[:, 0], atol=1e-5)
    assert jnp.allclose(ffn_w2[:, 0, 0], ref[:, 1], atol=1e-5)

    print("KERNEL_OK")
</pallas_src>

<mosaic_0001>
module attributes {stable_mosaic.version = 11 : i64} {
  func.func @_gate_kernel(%arg0: i32, %arg1: i32, %arg2: memref<2x16x128xf32, #tpu.memory_space<vmem>>, %arg3: memref<128x128xf32, #tpu.memory_space<vmem>>, %arg4: memref<1x128xf32, #tpu.memory_space<vmem>>, %arg5: memref<128x2xf32, #tpu.memory_space<vmem>>, %arg6: memref<1x2xf32, #tpu.memory_space<vmem>>, %arg7: memref<2x2xf32, #tpu.memory_space<vmem>>, %arg8: memref<2x128xf32, #tpu.memory_space<vmem>>) attributes {dimension_semantics = [#tpu.dimension_semantics<parallel>, #tpu.dimension_semantics<arbitrary>], iteration_bounds = array<i64: 1, 4>, scalar_prefetch = 0 : i64, scratch_operands = 1 : i64, tpu.core_type = #tpu.core_type<tc>, window_params = [{transform_indices = @transform_0, window_bounds = array<i64: 2, 16, 128>}, {pipeline_mode = #tpu.pipeline_mode<synchronous>, transform_indices = @transform_1, window_bounds = array<i64: 128, 128>}, {pipeline_mode = #tpu.pipeline_mode<synchronous>, transform_indices = @transform_2, window_bounds = array<i64: 1, 128>}, {pipeline_mode = #tpu.pipeline_mode<synchronous>, transform_indices = @transform_3, window_bounds = array<i64: 128, 2>}, {pipeline_mode = #tpu.pipeline_mode<synchronous>, transform_indices = @transform_4, window_bounds = array<i64: 1, 2>}, {transform_indices = @transform_5, window_bounds = array<i64: 2, 2>}]} {
    %c0_i32 = arith.constant 0 : i32
    %0 = arith.cmpi eq, %arg1, %c0_i32 : i32
    %1 = arith.extui %0 : i1 to i32
    %c0_i32_0 = arith.constant 0 : i32
    %2 = arith.cmpi ne, %1, %c0_i32_0 : i32
    scf.if %2 {
      %cst_8 = arith.constant 0.000000e+00 : f32
      %11 = vector.broadcast %cst_8 : f32 to vector<2x128xf32>
      %c0_9 = arith.constant 0 : index
      %c0_10 = arith.constant 0 : index
      %12 = vector.load %arg8[%c0_9, %c0_10] : memref<2x128xf32, #tpu.memory_space<vmem>>, vector<2x128xf32>
      tpu.vector_store %arg8[%c0_9, %c0_10], %11 {strides = array<i32>} : memref<2x128xf32, #tpu.memory_space<vmem>>, vector<2x128xf32>,
    } else {
    }
    %c0 = arith.constant 0 : index
    %c0_1 = arith.constant 0 : index
    %3 = vector.load %arg8[%c0, %c0_1] : memref<2x128xf32, #tpu.memory_space<vmem>>, vector<2x128xf32>
    %c0_2 = arith.constant 0 : index
    %c0_3 = arith.constant 0 : index
    %c0_4 = arith.constant 0 : index
    %4 = vector.load %arg2[%c0_2, %c0_3, %c0_4] : memref<2x16x128xf32, #tpu.memory_space<vmem>>, vector<2x16x128xf32>
    %cst = arith.constant dense<0.000000e+00> : vector<2x128xf32>
    %5 = vector.multi_reduction <add>, %4, %cst [1] : vector<2x16x128xf32> to vector<2x128xf32>
    %6 = arith.addf %3, %5 : vector<2x128xf32>
    %c0_5 = arith.constant 0 : index
    %c0_6 = arith.constant 0 : index
    %7 = vector.load %arg8[%c0_5, %c0_6] : memref<2x128xf32, #tpu.memory_space<vmem>>, vector<2x128xf32>
    tpu.vector_store %arg8[%c0_5, %c0_6], %6 {strides = array<i32>} : memref<2x128xf32, #tpu.memory_space<vmem>>, vector<2x128xf32>,
    %c3_i32 = arith.constant 3 : i32
    %8 = arith.cmpi eq, %arg1, %c3_i32 : i32
    %9 = arith.extui %8 : i1 to i32
    %c0_i32_7 = arith.constant 0 : i32
    %10 = arith.cmpi ne, %9, %c0_i32_7 : i32
    scf.if %10 {
      %c0_8 = arith.constant 0 : index
      %c0_9 = arith.constant 0 : index
      %11 = vector.load %arg8[%c0_8, %c0_9] : memref<2x128xf32, #tpu.memory_space<vmem>>, vector<2x128xf32>
      %cst_10 = arith.constant 1.562500e-02 : f32
      %12 = vector.broadcast %cst_10 : f32 to vector<2x128xf32>
      %13 = arith.mulf %11, %12 : vector<2x128xf32>
      %c0_11 = arith.constant 0 : index
      %c0_12 = arith.constant 0 : index
      %14 = vector.load %arg3[%c0_11, %c0_12] : memref<128x128xf32, #tpu.memory_space<vmem>>, vector<128x128xf32>
      %cst_13 = arith.constant dense<0.000000e+00> : vector<2x128xf32>
      %15 = tpu.matmul %13, %14, %cst_13 {dimension_numbers = #tpu.dot_dimension_numbers<[1], [0], [0], [1], [0, 0, 1, 1], [], []>} : vector<2x128xf32>, vector<128x128xf32>, vector<2x128xf32> -> vector<2x128xf32>
      %c0_14 = arith.constant 0 : index
      %c0_15 = arith.constant 0 : index
      %16 = vector.load %arg4[%c0_14, %c0_15] : memref<1x128xf32, #tpu.memory_space<vmem>>, vector<1x128xf32>
      %17 = vector.broadcast %16 : vector<1x128xf32> to vector<2x128xf32>
      %18 = arith.addf %15, %17 : vector<2x128xf32>
      %cst_16 = arith.constant 5.000000e-01 : f32
      %19 = vector.broadcast %cst_16 : f32 to vector<2x128xf32>
      %20 = arith.mulf %19, %18 : vector<2x128xf32>
      %cst_17 = arith.constant 0.707106769 : f32
      %21 = vector.broadcast %cst_17 : f32 to vector<2x128xf32>
      %22 = arith.mulf %18, %21 : vector<2x128xf32>
      %23 = math.erf %22 : vector<2x128xf32>
      %cst_18 = arith.constant 1.000000e+00 : f32
      %24 = vector.broadcast %cst_18 : f32 to vector<2x128xf32>
      %25 = arith.addf %24, %23 : vector<2x128xf32>
      %26 = arith.mulf %20, %25 : vector<2x128xf32>
      %c0_19 = arith.constant 0 : index
      %c0_20 = arith.constant 0 : index
      %27 = vector.load %arg5[%c0_19, %c0_20] : memref<128x2xf32, #tpu.memory_space<vmem>>, vector<128x2xf32>
      %cst_21 = arith.constant dense<0.000000e+00> : vector<2x2xf32>
      %28 = tpu.matmul %26, %27, %cst_21 {dimension_numbers = #tpu.dot_dimension_numbers<[1], [0], [0], [1], [0, 0, 1, 1], [], []>} : vector<2x128xf32>, vector<128x2xf32>, vector<2x2xf32> -> vector<2x2xf32>
      %c0_22 = arith.constant 0 : index
      %c0_23 = arith.constant 0 : index
      %29 = vector.load %arg6[%c0_22, %c0_23] : memref<1x2xf32, #tpu.memory_space<vmem>>, vector<1x2xf32>
      %30 = vector.broadcast %29 : vector<1x2xf32> to vector<2x2xf32>
      %31 = arith.addf %28, %30 : vector<2x2xf32>
      %32 = arith.negf %31 : vector<2x2xf32>
      %33 = math.exp %32 : vector<2x2xf32>
      %cst_24 = arith.constant 1.000000e+00 : f32
      %34 = vector.broadcast %cst_24 : f32 to vector<2x2xf32>
      %35 = arith.addf %34, %33 : vector<2x2xf32>
      %36 = arith.divf %34, %35 : vector<2x2xf32>
      %c0_25 = arith.constant 0 : index
      %c0_26 = arith.constant 0 : index
      %37 = vector.load %arg7[%c0_25, %c0_26] : memref<2x2xf32, #tpu.memory_space<vmem>>, vector<2x2xf32>
      tpu.vector_store %arg7[%c0_25, %c0_26], %36 {strides = array<i32>} : memref<2x2xf32, #tpu.memory_space<vmem>>, vector<2x2xf32>,
    } else {
    }
    return
  }
  func.func @transform_0(%arg0: i32, %arg1: i32) -> (i32, i32, i32) {
    %c0_i32 = arith.constant 0 : i32
    %c0_i32_0 = arith.constant 0 : i32
    return %arg0, %arg1, %c0_i32 : i32, i32, i32
  }
  func.func @transform_1(%arg0: i32, %arg1: i32) -> (i32, i32) {
    %c0_i32 = arith.constant 0 : i32
    %c0_i32_0 = arith.constant 0 : i32
    %c0_i32_1 = arith.constant 0 : i32
    return %c0_i32, %c0_i32_0 : i32, i32
  }
  func.func @transform_2(%arg0: i32, %arg1: i32) -> (i32, i32) {
    %c0_i32 = arith.constant 0 : i32
    %c0_i32_0 = arith.constant 0 : i32
    %c0_i32_1 = arith.constant 0 : i32
    return %c0_i32, %c0_i32_0 : i32, i32
  }
  func.func @transform_3(%arg0: i32, %arg1: i32) -> (i32, i32) {
    %c0_i32 = arith.constant 0 : i32
    %c0_i32_0 = arith.constant 0 : i32
    %c0_i32_1 = arith.constant 0 : i32
    return %c0_i32, %c0_i32_0 : i32, i32
  }
  func.func @transform_4(%arg0: i32, %arg1: i32) -> (i32, i32) {
    %c0_i32 = arith.constant 0 : i32
    %c0_i32_0 = arith.constant 0 : i32
    %c0_i32_1 = arith.constant 0 : i32
    return %c0_i32, %c0_i32_0 : i32, i32
  }
  func.func @transform_5(%arg0: i32, %arg1: i32) -> (i32, i32) {
    %c0_i32 = arith.constant 0 : i32
    %c0_i32_0 = arith.constant 0 : i32
    return %arg0, %c0_i32 : i32, i32
  }
}

</mosaic_0001>

<bundles_post_ra>
// kernel: tpu_custom_call.1
= control target key start
LH: loop header
LB: loop body
LE: loop exit
PB: predicated region body
PF: predicated region fallthrough
CT: control target
= control target key end

     0   :  { %10 = vsyncpa [#allocation5], 0  ;;  %s945_s0 = inlined_call_operand.vmem [shape: f32[2,64,128], index: 0, kind: input, shape index: {}]   ;;  %s946_s1 = inlined_call_operand.hbm [shape: f32[128,128], index: 1, kind: input, shape index: {}]   ;;  %s947_s2 = inlined_call_operand.vmem [shape: f32[1,128], index: 2, kind: input, shape index: {}]   ;;  %s948_s3 = inlined_call_operand.vmem [shape: f32[128,2], index: 3, kind: input, shape index: {}]   ;;  %s949_s4 = inlined_call_operand.vmem [shape: f32[1,2], index: 4, kind: input, shape index: {}]   ;;  %s950_s5 = inlined_call_operand.hbm [shape: f32[2,2], index: 5, kind: output, shape index: {}]  }
   0x1   :  { %11 = vsyncpa [#allocation6], 0  ;;  %s793_s18 = smov 0   ;;  %s795_s19 = smov 0  }
   0x2   :  { %s797_s20 = smov 0   ;;  %s799_s21 = smov 0  }
   0x3   :  { %s801_s22 = smov 0  }
   0x4 LB: > { %s564_s23 = sadd.s32 4294967295, %s756_s22   ;;  %s26_s24 = sadd.s32 1, %s752_s21  ;;  %s756_s22 = sphi %s801_s22, %s17_s22   ;;  %s752_s21 = sphi %s799_s21, %s957_s21   ;;  %s748_s20 = sphi %s797_s20, %s956_s20   ;;  %s744_s19 = sphi %s795_s19, %s955_s19   ;;  %s740_s18 = sphi %s793_s18, %s954_s18  }
   0x5   : > { %p27_p0 = scmp.ge.s32.totalorder %s26_s24, 4  ;;  %s38_s25 = sadd.s32 1, %s744_s19 }
   0x6   : > { %p45_p1 = scmp.ne.s32.totalorder %s744_s19, %s740_s18  ;;  %p46_p2 = scmp.eq.s32.totalorder %s756_s22, 0 }
   0x7   : > { %s959_s24 = smov (%p27_p0, %s26_s24), 0  ;;  %p565_p4 = scmp.ge.s32.totalorder %s756_s22, 1 }
   0x8   : > { %p826_p3 = por %p46_p2, %p45_p1  ;;  %s34_s27 = ssub.s32 %s752_s21, %s959_s24 }
   0x9   : > { %p172_p5 = scmp.lt.s32.totalorder %s756_s22, 5  ;;  %p36_p6 = scmp.eq.s32.totalorder %s34_s27, 0 }
   0xa   : > { %p840_p8 = scmp.eq.s32.totalorder %s564_s23, 0  ;;  %s183_s8 = sshll.u32 %s946_s1, 4  ;;  %s184_s8 = int_to_ptr.hbm [resolvable:$true] %s183_s8 }
   0xb   : > { %p834_p7 = pnand %p565_p4, %p172_p5  ;;  %s758_s9 = smov [#allocation4]  }
   0xc   : > { %s845_s30 = scalar_select %p36_p6, %s744_s19, %s38_s25  }
   0xd   : > { %p591_p9 = pneg %p834_p7  ;;  %s185_s10 = sshll.u32 %s758_s9, 4  ;;  %s186_s10 = int_to_ptr.vmem [resolvable:$true] %s185_s10 }
   0xe   : > { %s759_s11 = smov 128   ;;  %s760_s12 = smov 8  }
   0xf   : > { %p592_p10 = pnand %p840_p8, %p591_p9  ;;  %p567_p11 = scmp.ge.s32.totalorder %s756_s22, 4 }
  0x11   : > { %594 = dma.hbm_to_vmem [thread:$0]  (!%p592_p10), %s184_s8, 2048, %s186_s10, [#allocation5], %s759_s11, %s759_s11, %s760_s12  }
  0x12   : > { %204 = sbr.rel (%p567_p11) target bundleno = 31 (0x1f), region = 32 }
  0x17   : > { %207 = sbr.rel (!%p826_p3) target bundleno = 31 (0x1f), region = 36  ;;  %s209_s13 = sand.u32 (%p826_p3), 1, %s744_s19  }
  0x18   : > { %s582_s14 = sshll.u32 (%p826_p3), %s752_s21, 4  ;;  %s568_s15 = sshll.u32 (%p826_p3), %s209_s13, 5 }
  0x19   : > { %s217_s25 = scalar_lea.vmem (%p826_p3), %s945_s0, %s582_s14  ;;  %s211_s27 = scalar_lea.vmem (%p826_p3), [#allocation3], %s568_s15 }
  0x1a   : > { %v252_v0 = vld [vmem:[%s217_s25] sm:$0xff] (%p826_p3)  ;;  %v254_v1 = vld [vmem:[%s217_s25 + $0x8] sm:$0xff] (%p826_p3) }
  0x1b   : > { %v256_v2 = vld [vmem:[%s217_s25 + $0x40] sm:$0xff] (%p826_p3)  ;;  %253 = vst [vmem:[%s211_s27] sm:$0xff] (%p826_p3), %v252_v0  ;;  %v258_v3 = vld [vmem:[%s217_s25 + $0x48] sm:$0xff] (%p826_p3) }
  0x1c   : > { %255 = vst [vmem:[%s211_s27 + $0x8] sm:$0xff] %v254_v1 }
  0x1d   : > { %257 = vst [vmem:[%s211_s27 + $0x10] sm:$0xff] %v256_v2 }
  0x1e   : > { %259 = vst [vmem:[%s211_s27 + $0x18] sm:$0xff] %v258_v3 }
  0x1f PF: > { %268 = sbr.rel (%p834_p7) target bundleno = 440 (0x1b8), region = 74  ;;  %s271_s26 = sand.u32 (!%p834_p7), 1, %s740_s18  }
  0x20   : > { %s572_s6 = sshll.u32 (!%p834_p7), %s271_s26, 5 }
  0x21   : > { %s273_s7 = scalar_lea.vmem (!%p834_p7), [#allocation3], %s572_s6 }
  0x24   : > { %731 = dma.done.wait (%p840_p8), [#allocation5], 2048  }
  0x25   : > { %733 = vsyncadd (%p840_p8), [#allocation5], 4294965248  ;;  %p574_p12 = scmp.ne.s32.totalorder %s748_s20, 0 }
  0x27   : > { %303 = sbr.rel (%p574_p12) target bundleno = 46 (0x2e), region = 86 }
  0x2c   : > { %v761_v4 = vmov 0.0  }
  0x2d   : > { %304 = vst [vmem:[#allocation2] sm:$0x3] %v761_v4 }
  0x2e PF: > { %v306_v5 = vld [vmem:[%s273_s7] sm:$0xff]  ;;  %v307_v6 = vld [vmem:[%s273_s7 + $0x8] sm:$0xff]  ;;  %v308_v7 = vld [vmem:[%s273_s7 + $0x10] sm:$0xff]  ;;  %vm326_vm0 = vcmask 1041409   ;;  %p575_p13 = scmp.ne.s32.totalorder %s748_s20, 3 }
  0x2f   : > { %v309_v8 = vld [vmem:[%s273_s7 + $0x18] sm:$0xff]  ;;  %v310_v9 = vadd.f32 %v307_v6, %v306_v5 }
  0x30   : > { %v317_v10 = vadd.f32 %v309_v8, %v308_v7 }
  0x31   : > { %v311_v11 = vrot.slane %v310_v9, 4 }
  0x32   : > { %v318_v12 = vrot.slane %v317_v10, 4 }
  0x33   : > { %v312_v13 = vadd.f32 %v311_v11, %v310_v9 }
  0x34   : > { %v319_v14 = vadd.f32 %v318_v12, %v317_v10  ;;  %v305_v22 = vld [vmem:[#allocation2] sm:$0x3] }
  0x35   : > { %v313_v15 = vrot.slane %v312_v13, 2 }
  0x36   : > { %v320_v16 = vrot.slane %v319_v14, 2 }
  0x37   : > { %v314_v17 = vadd.f32 %v313_v15, %v312_v13 }
  0x38   : > { %v321_v18 = vadd.f32 %v320_v16, %v319_v14 }
  0x39   : > { %v315_v19 = vrot.slane %v314_v17, 1 }
  0x3a   : > { %v322_v20 = vrot.slane %v321_v18, 1 }
  0x3b   : > { %v316_v21 = vadd.f32 %v315_v19, %v314_v17 }
  0x3c   : > { %v323_v23 = vadd.f32 %v322_v20, %v321_v18 }
  0x3d   : > { %334 = sbr.rel (%p575_p13) target bundleno = 434 (0x1b2), region = 90 }
  0x3e   : > { %v327_v24 = vsel %vm326_vm0, %v323_v23, %v316_v21 }
  0x3f   : > { %v329_v25 = vadd.f32 %v327_v24, %v305_v22 }
  0x41   : > { %330 = vst [vmem:[#allocation2] sm:$0x3] %v329_v25 }
  0x42   : > { %v352_v26 = vld [vmem:[#allocation4 + $0x78] sm:$0xff]  ;;  %v351_v27 = vld [vmem:[#allocation4 + $0x70] sm:$0xff]  ;;  %v350_v28 = vld [vmem:[#allocation4 + $0x68] sm:$0xff]  ;;  %vm480_vm8 = vcmask 9216  }
  0x43   : > { %357 = vmatpush.msra.mxu0 %v352_v26  ;;  %v349_v29 = vld [vmem:[#allocation4 + $0x60] sm:$0xff]  ;;  %v348_v30 = vld [vmem:[#allocation4 + $0x58] sm:$0xff]  ;;  %v347_v31 = vld [vmem:[#allocation4 + $0x50] sm:$0xff] }
  0x44   : > { %v346_v32 = vld [vmem:[#allocation4 + $0x48] sm:$0xff]  ;;  %v345_v33 = vld [vmem:[#allocation4 + $0x40] sm:$0xff]  ;;  %v344_v34 = vld [vmem:[#allocation4 + $0x38] sm:$0xff] }
  0x45   : > { %358 = vmatpush.msra.mxu0 %v351_v27  ;;  %v343_v35 = vld [vmem:[#allocation4 + $0x30] sm:$0xff]  ;;  %v342_v36 = vld [vmem:[#allocation4 + $0x28] sm:$0xff]  ;;  %v341_v37 = vld [vmem:[#allocation4 + $0x20] sm:$0xff] }
  0x46   : > { %v340_v38 = vld [vmem:[#allocation4 + $0x18] sm:$0xff]  ;;  %v339_v39 = vld [vmem:[#allocation4 + $0x10] sm:$0xff]  ;;  %v338_v41 = vld [vmem:[#allocation4 + $0x8] sm:$0xff] }
  0x47   : > { %359 = vmatpush.msra.mxu0 %v350_v28  ;;  %v337_v42 = vld [vmem:[#allocation4] sm:$0xff]  ;;  %v436_v44 = vld [vmem:[%s948_s3 + $0x78] sm:$0xff]  ;;  %v435_v45 = vld [vmem:[%s948_s3 + $0x70] sm:$0xff] }
  0x48   : > { %v335_v40 = vld [vmem:[#allocation2] sm:$0x3]  ;;  %441 = vmatpush.msra.mxu1 %v436_v44  ;;  %v434_v46 = vld [vmem:[%s948_s3 + $0x68] sm:$0xff]  ;;  %v432_v49 = vld [vmem:[%s948_s3 + $0x58] sm:$0xff] }
  0x49   : > { %360 = vmatpush.msra.mxu0 %v349_v29  ;;  %v336_v43 = vmul.f32 0.015625, %v335_v40  ;;  %v433_v47 = vld [vmem:[%s948_s3 + $0x60] sm:$0xff]  ;;  %v431_v50 = vld [vmem:[%s948_s3 + $0x50] sm:$0xff]  ;;  %v430_v52 = vld [vmem:[%s948_s3 + $0x48] sm:$0xff] }
  0x4a   : > { %442 = vmatpush.msra.mxu1 %v435_v45  ;;  %v644_v48 = vld [vmem:[%s947_s2] ss:$0 sm:$0xff]  ;;  %v428_v56 = vld [vmem:[%s948_s3 + $0x38] sm:$0xff]  ;;  %v427_v58 = vld [vmem:[%s948_s3 + $0x30] sm:$0xff] }
  0x4b   : > { %361 = vmatpush.msra.mxu0 %v348_v30  ;;  %v429_v54 = vld [vmem:[%s948_s3 + $0x40] sm:$0xff]  ;;  %v426_v60 = vld [vmem:[%s948_s3 + $0x28] sm:$0xff]  ;;  %v424_v2 = vld [vmem:[%s948_s3 + $0x18] sm:$0xff] }
  0x4c   : > { %443 = vmatpush.msra.mxu1 %v434_v46  ;;  %v425_v63 = vld [vmem:[%s948_s3 + $0x20] sm:$0xff]  ;;  %v423_v5 = vld [vmem:[%s948_s3 + $0x10] sm:$0xff]  ;;  %v422_v8 = vld [vmem:[%s948_s3 + $0x8] sm:$0xff] }
  0x4d   : > { %362 = vmatpush.msra.mxu0 %v347_v31  ;;  %v421_v10 = vld [vmem:[%s948_s3] sm:$0xff] }
  0x4e   : > { %444 = vmatpush.msra.mxu1 %v433_v47 }
  0x4f   : > { %363 = vmatpush.msra.mxu0 %v346_v32 }
  0x50   : > { %445 = vmatpush.msra.mxu1 %v432_v49 }
  0x51   : > { %364 = vmatpush.msra.mxu0 %v345_v33 }
  0x52   : > { %446 = vmatpush.msra.mxu1 %v431_v50 }
  0x53   : > { %365 = vmatpush.msra.mxu0 %v344_v34 }
  0x54   : > { %447 = vmatpush.msra.mxu1 %v430_v52 }
  0x55   : > { %366 = vmatpush.msra.mxu0 %v343_v35 }
  0x56   : > { %448 = vmatpush.msra.mxu1 %v429_v54 }
  0x57   : > { %367 = vmatpush.msra.mxu0 %v342_v36 }
  0x58   : > { %449 = vmatpush.msra.mxu1 %v428_v56 }
  0x59   : > { %368 = vmatpush.msra.mxu0 %v341_v37 }
  0x5a   : > { %450 = vmatpush.msra.mxu1 %v427_v58 }
  0x5b   : > { %369 = vmatpush.msra.mxu0 %v340_v38  ;;  %v645_v38 = vld [vmem:[%s949_s4] ss:$0 sm:$0xff] }
  0x5c   : > { %451 = vmatpush.msra.mxu1 %v426_v60 }
  0x5d   : > { %370 = vmatpush.msra.mxu0 %v339_v39 }
  0x5e   : > { %452 = vmatpush.msra.mxu1 %v425_v63 }
  0x5f   : > { %371 = vmatpush.msra.mxu0 %v338_v41 }
  0x60   : > { %453 = vmatpush.msra.mxu1 %v424_v2 }
  0x61   : > { %372 = vmatpush.msra.mxu0 %v337_v42 }
  0x62   : > { %373 = vmatmul.f32.vlgmr.msra.gmra.mxu0 %v336_v43  ;;  %454 = vmatpush.msra.mxu1 %v423_v5 }
  0x64   : > { %455 = vmatpush.msra.mxu1 %v422_v8 }
  0x66   : > { %456 = vmatpush.msra.mxu1 %v421_v10 }
  0xdf   : > { %v374_v51 = vpop.f32.mrf.mxu0 }
  0xe0   : > { %v375_v53 = vadd.f32 %v644_v48, %v374_v51 }
  0xe2   : > { %v378_v55 = vmul.f32 0.70710677, %v375_v53  ;;  %v377_v35 = vmul.f32 0.5, %v375_v53 }
  0xe4   : > { %v379_v57 = vmul.f32 %v378_v55, %v378_v55 }
  0xe6   : > { %v380_v59 = vmin.f32 %v379_v57, 16.0 }
  0xe8   : > { %v381_v61 = vmul.f32 2.1237322e-06, %v380_v59  ;;  %v392_v62 = vmul.f32 3.8918573e-05, %v380_v59 }
  0xea   : > { %v382_v0 = vadd.f32 0.00028619796, %v381_v61  ;;  %v393_v1 = vadd.f32 0.001143296, %v392_v62 }
  0xec   : > { %v383_v3 = vmul.f32 %v382_v0, %v380_v59  ;;  %v394_v4 = vmul.f32 %v393_v1, %v380_v59 }
  0xee   : > { %v395_v6 = vadd.f32 0.014752088, %v394_v4  ;;  %v384_v7 = vadd.f32 0.0036580483, %v383_v3 }
  0xf0   : > { %v396_v9 = vmul.f32 %v395_v6, %v380_v59  ;;  %v385_v12 = vmul.f32 %v384_v7, %v380_v59 }
  0xf2   : > { %v397_v11 = vadd.f32 0.112945676, %v396_v9  ;;  %v386_v15 = vadd.f32 0.05243302, %v385_v12 }
  0xf4   : > { %v398_v13 = vmul.f32 %v397_v11, %v380_v59  ;;  %v387_v18 = vmul.f32 %v386_v15, %v380_v59 }
  0xf6   : > { %v399_v14 = vadd.f32 0.4994258, %v398_v13  ;;  %v388_v19 = vadd.f32 0.18741608, %v387_v18 }
  0xf8   : > { %v400_v16 = vmul.f32 %v399_v14, %v380_v59  ;;  %v389_v21 = vmul.f32 %v388_v19, %v380_v59 }
  0xfa   : > { %v401_v17 = vadd.f32 1.0, %v400_v16  ;;  %v390_v25 = vadd.f32 1.1283791, %v389_v21 }
  0xfc   : > { %646 = vrcp.f32 %v401_v17  ;;  %v413_v24 = vand.u32 2147483648, %v401_v17  ;;  %v411_v27 = vand.u32 2147483647, %v401_v17  ;;  %vm407_vm2 = vweird.f32 %v401_v17 }
  0xfd   : > { %v391_v30 = vmul.f32 %v390_v25, %v378_v55 }
  0xfe   : > { %v414_v29 = vor.u32 1.1754944e-38, %v413_v24  ;;  %vm412_vm4 = vcmp.eq.f32.partialorder %v411_v27, 8.507059e+37 }
 0x102   : > { %v647_v20 = vpop.eup %646 }
 0x103   : > { %v403_v22 = vmul.f32 %v647_v20, %v401_v17  ;;  %vm408_vm1 = vweird.f32 %v647_v20 }
 0x104   : > { %vm409_vm3 = vmor %vm407_vm2, %vm408_vm1 }
 0x105   : > { %v404_v23 = vsub.f32 1.0, %v403_v22 }
 0x107   : > { %v405_v26 = vmul.f32 %v647_v20, %v404_v23 }
 0x109   : > { %v406_v28 = vadd.f32 %v647_v20, %v405_v26 }
 0x10b   : > { %v410_v31 = vsel %vm409_vm3, %v647_v20, %v406_v28 }
 0x10c   : > { %v415_v32 = vsel %vm412_vm4, %v414_v29, %v410_v31 }
 0x10d   : > { %v416_v33 = vmul.f32 %v415_v32, %v391_v30 }
 0x10f   : > { %v576_v34 = vclamps-f32 %v416_v33, 1.0 }
 0x111   : > { %v419_v36 = vadd.f32 1.0, %v576_v34 }
 0x113   : > { %v420_v37 = vmul.f32 %v419_v36, %v377_v35 }
 0x115   : > { %457 = vmatmul.f32.vlgmr.msra.gmra.mxu1 %v420_v37 }
 0x192   : > { %v458_v39 = vpop.f32.mrf.mxu1 }
 0x193   : > { %v459_v40 = vadd.f32 %v645_v38, %v458_v39 }
 0x195   : > { %v577_v41 = vmul.f32 -1.442695, %v459_v40 }
 0x197   : > { %648 = vpow2.f32 %v577_v41 }
 0x19d   : > { %v649_v42 = vpop.eup %648 }
 0x19e   : > { %v464_v43 = vadd.f32 1.0, %v649_v42 }
 0x1a0   : > { %650 = vrcp.f32 %v464_v43  ;;  %v476_v47 = vand.u32 2147483648, %v464_v43  ;;  %v474_v49 = vand.u32 2147483647, %v464_v43  ;;  %vm470_vm6 = vweird.f32 %v464_v43 }
 0x1a2   : > { %v477_v51 = vor.u32 1.1754944e-38, %v476_v47  ;;  %vm475_vm9 = vcmp.eq.f32.partialorder %v474_v49, 8.507059e+37 }
 0x1a6   : > { %v651_v44 = vpop.eup %650 }
 0x1a7   : > { %v466_v45 = vmul.f32 %v651_v44, %v464_v43  ;;  %vm471_vm5 = vweird.f32 %v651_v44 }
 0x1a8   : > { %vm472_vm7 = vmor %vm470_vm6, %vm471_vm5 }
 0x1a9   : > { %v467_v46 = vsub.f32 1.0, %v466_v45 }
 0x1ab   : > { %v468_v48 = vmul.f32 %v651_v44, %v467_v46 }
 0x1ad   : > { %v469_v50 = vadd.f32 %v651_v44, %v468_v48 }
 0x1af   : > { %v473_v52 = vsel %vm472_vm7, %v651_v44, %v469_v50 }
 0x1b0   : > { %v478_v53 = vsel %vm475_vm9, %v477_v51, %v473_v52 }
 0x1b1   : > { %481 = vst.msk [vmem:[#allocation7] sm:$0x3] %vm480_vm8, %v478_v53 }
 0x1b2 PF: > { %p597_p0 = scmp.eq.s32.totalorder %s564_s23, 3  ;;  %s492_s18 = sshll.u32 %s950_s5, 4  ;;  %s493_s18 = int_to_ptr.hbm [resolvable:$true] %s492_s18 }
 0x1b3   : > { %s762_s20 = smov [#allocation7]  }
 0x1b4   : > { %s490_s28 = sshll.u32 %s762_s20, 4  ;;  %s491_s28 = int_to_ptr.vmem [resolvable:$true] %s490_s28 }
 0x1b5   : > { %588 = dma.vmem_to_hbm [thread:$0]  (%p597_p0), %s491_s28, 32, %s493_s18, [#allocation6]  }
 0x1b6   : > { %735 = dma.done.wait (%p597_p0), [#allocation6], 32  }
 0x1b7   : > { %737 = vsyncadd (%p597_p0), [#allocation6], 4294967264 }
 0x1b8 PF: > { %s17_s22 = sadd.s32 1, %s756_s22   ;;  %s954_s18 = smov %s744_s19 }
 0x1b9   : > { %p14_p1 = scmp.ge.s32.totalorder %s17_s22, 6   ;;  %s955_s19 = smov %s845_s30 }
 0x1ba   : > { %s956_s20 = smov %s752_s21  ;;  %s957_s21 = smov %s959_s24 }
 0x1bb   :  { %16 = sbr.rel (!%p14_p1) target bundleno = 4 (0x4), region = 124 }
 0x1c0   :  { %506 = vsyncpa [#allocation5], 1 }
 0x1c1   :  { %508 = vsyncpa [#allocation5 + $0x1], 1 }
 0x1c2   :  { %509 = vsyncpa [#allocation6], 1 }
 0x1c3   :  { %511 = vsyncpa [#allocation6 + $0x1], 1 }

</bundles_post_ra>
